<compile_context>
chip_gen: v7x
topology: tpu7x:2x2x1
jax: 0.10.0
libtpu: 0.0.40
codegen_flags: <defaults>
</compile_context>

<pallas_src>
import functools

import jax
import jax.numpy as jnp
from jax.experimental import pallas as pl
from jax.experimental.pallas import tpu as pltpu


# -----------------------------------------------------------------------------
# Deterministic symmetric fake-quantizer standing in for input_quant /
# output_quant / the QuantConv1d weight quantizer (power-of-two scales).
# -----------------------------------------------------------------------------
def _fake_quant(v, scale, bits):
    qmin = -(2 ** (bits - 1))
    qmax = 2 ** (bits - 1) - 1
    return jnp.clip(jnp.round(v / scale), qmin, qmax) * scale


def _round_up(x, m):
    return ((x + m - 1) // m) * m


# -----------------------------------------------------------------------------
# Pallas kernel: one lane-dense row tile per grid step.
#   x_ref : (K*C_in, ROW_TILE)  bf16 (or f32)  pre-quantized im2col slab,
#                                              rows (batch*length) on lanes
#   w_ref : (C_out, K*C_in)     bf16 (or f32)  masked + quantized weights (resident)
#   o_ref : (C_out, ROW_TILE)   bf16 (or f32)  lane-dense output (NCL order)
# -----------------------------------------------------------------------------
def sparse_conv1d_kernel(x_ref, w_ref, o_ref, *,
                         inv_out_scale, out_scale, out_qmin, out_qmax,
                         apply_output_quant):
    # Single MXU matmul per tile: (C_out, K*C_in) @ (K*C_in, tile) -> (C_out, tile)
    acc = jnp.dot(w_ref[...], x_ref[...], preferred_element_type=jnp.float32)
    if apply_output_quant:
        # precomputed inverse scale (no divide): mul / round / clip / mul
        acc = jnp.clip(jnp.round(acc * inv_out_scale), out_qmin, out_qmax) * out_scale
    o_ref[...] = acc.astype(o_ref.dtype)


# -----------------------------------------------------------------------------
# Wrapper: masking, weight quant, input quant, transpose-free im2col, pallas_call.
# -----------------------------------------------------------------------------
def sparse_conv1d_neq_forward(x_ncl, weight, mask, *, padding=1,
                              apply_input_quant=True, apply_output_quant=True,
                              in_scale=0.25, in_bits=4,
                              out_scale=0.25, out_bits=4,
                              w_scale=0.125, w_bits=4,
                              row_tile=2048):
    """x_ncl: (N, C_in, L) f32.  weight/mask: (C_out, C_in, K)."""
    n, c_in, seq_len = x_ncl.shape
    c_out, _, k = weight.shape
    out_len = seq_len + 2 * padding - k + 1
    kc = k * c_in

    # bf16 is exact for the quantized levels (power-of-two scales, <=8 bits);
    # keep full f32 on the MXU only when the input is NOT quantized.
    compute_dtype = jnp.bfloat16 if apply_input_quant else jnp.float32
    out_dtype = jnp.bfloat16 if apply_output_quant else jnp.float32

    # Masked, fake-quantized weights (QuantConv1d stand-in).
    # (C_out, C_in, K) -> (C_out, K, C_in) -> (C_out, K*C_in); col j = kk*C_in + ci
    masked_w = _fake_quant(weight.astype(jnp.float32), w_scale, w_bits) * mask
    w2 = jnp.transpose(masked_w, (0, 2, 1)).reshape(c_out, kc).astype(compute_dtype)

    # Input quant in the wrapper, BEFORE the K-fold im2col expansion.
    x = x_ncl.astype(jnp.float32)
    if apply_input_quant:
        x = _fake_quant(x, in_scale, in_bits)
    x = x.astype(compute_dtype)

    # Transpose-free slab construction (rows on the lane axis):
    #   x2t[kk*C_in + ci, b*out_len + t] = x_pad[b, ci, t + kk]
    # Only a major (N, C_in) swap on the un-expanded padded input; the K shifted
    # slices stack directly into (K, C_in, N, out_len) and reshape in place.
    x_pad = jnp.pad(x, ((0, 0), (0, 0), (padding, padding)))     # (N, C_in, Lp)
    x_cnl = jnp.transpose(x_pad, (1, 0, 2))                      # (C_in, N, Lp)
    windows = jnp.stack([x_cnl[:, :, i:i + out_len] for i in range(k)], axis=0)

    rows = n * out_len
    rows_pad = _round_up(rows, 128)
    tile = min(row_tile, rows_pad)                 # multiple of 128
    # Guarantee >=2 grid steps when possible so both v7x TensorCores get work.
    if rows_pad >= 256 and rows_pad // tile < 2:
        tile = _round_up(rows_pad // 2, 128)
    rows_pad = _round_up(rows_pad, tile)

    x2t = windows.reshape(kc, rows)
    x2t = jnp.pad(x2t, ((0, 0), (0, rows_pad - rows)))           # (K*C_in, rows_pad)

    kernel = functools.partial(
        sparse_conv1d_kernel,
        inv_out_scale=1.0 / out_scale, out_scale=out_scale,
        out_qmin=float(-(2 ** (out_bits - 1))),
        out_qmax=float(2 ** (out_bits - 1) - 1),
        apply_output_quant=apply_output_quant)

    elt = jnp.dtype(compute_dtype).itemsize
    bytes_accessed = (kc * rows_pad * elt                     # slab
                      + c_out * kc * elt                      # weights
                      + c_out * rows_pad * jnp.dtype(out_dtype).itemsize)  # out
    cost = pl.CostEstimate(flops=2 * c_out * kc * rows_pad,
                           transcendentals=0,
                           bytes_accessed=bytes_accessed)

    out2 = pl.pallas_call(
        kernel,
        out_shape=jax.ShapeDtypeStruct((c_out, rows_pad), out_dtype),
        grid_spec=pltpu.PrefetchScalarGridSpec(
            num_scalar_prefetch=0,
            grid=(rows_pad // tile,),
            in_specs=[
                pl.BlockSpec((kc, tile), lambda r: (0, r)),
                pl.BlockSpec((c_out, kc), lambda r: (0, 0)),   # weights stay resident
            ],
            out_specs=pl.BlockSpec((c_out, tile), lambda r: (0, r)),
        ),
        compiler_params=pltpu.CompilerParams(
            dimension_semantics=("parallel",),
            # per-step buffers are tiny (kc*tile*elt); 32 MiB is safe on
            # v5e/v6e/v7x and keeps double-buffering alive everywhere.
            vmem_limit_bytes=32 * 1024 * 1024),
        cost_estimate=cost,
    )(x2t, w2)

    # (C_out, rows_pad) -> drop row padding -> (N, C_out, out_len)  (NCL), widen to f32
    out = out2[:, :rows].reshape(c_out, n, out_len)
    return jnp.transpose(out, (1, 0, 2)).astype(jnp.float32)


# -----------------------------------------------------------------------------
# Pure-JAX reference (same math, no Pallas).
# -----------------------------------------------------------------------------
def _reference(x_ncl, weight, mask, *, padding=1,
               in_scale=0.25, in_bits=4, out_scale=0.25, out_bits=4,
               w_scale=0.125, w_bits=4):
    xq = _fake_quant(x_ncl.astype(jnp.float32), in_scale, in_bits)
    mw = _fake_quant(weight.astype(jnp.float32), w_scale, w_bits) * mask
    out = jax.lax.conv_general_dilated(
        xq, mw, window_strides=(1,), padding=[(padding, padding)],
        dimension_numbers=("NCH", "OIH", "NCH"))
    return _fake_quant(out, out_scale, out_bits)


if __name__ == "__main__":
    key = jax.random.PRNGKey(0)
    k_x, k_w, k_m = jax.random.split(key, 3)

    batch, in_channels, out_channels, kernel_size, seq_length = 2, 4, 8, 3, 16

    x = jax.random.normal(k_x, (batch, in_channels, seq_length), jnp.float32)
    weight = jax.random.normal(
        k_w, (out_channels, in_channels, kernel_size), jnp.float32) * 0.5
    # deterministic sparse binary mask (stands in for the mask() module)
    mask = (jax.random.uniform(
        k_m, (out_channels, in_channels, kernel_size)) > 0.5).astype(jnp.float32)

    out = sparse_conv1d_neq_forward(x, weight, mask, padding=1)
    out = jax.block_until_ready(out)

    ref = _reference(x, weight, mask, padding=1)
    assert out.shape == (batch, out_channels, seq_length), out.shape
    assert jnp.allclose(out, ref, atol=1e-5, rtol=1e-5), "mismatch vs reference"

    print("KERNEL_OK")
</pallas_src>

<mosaic_0001>
module attributes {stable_mosaic.version = 11 : i64} {
  func.func @sparse_conv1d_kernel(%arg0: i32, %arg1: memref<12x128xbf16, #tpu.memory_space<vmem>>, %arg2: memref<8x12xbf16, #tpu.memory_space<vmem>>, %arg3: memref<8x128xbf16, #tpu.memory_space<vmem>>) attributes {dimension_semantics = [#tpu.dimension_semantics<parallel>], iteration_bounds = array<i64: 1>, scalar_prefetch = 0 : i64, scratch_operands = 0 : i64, tpu.core_type = #tpu.core_type<tc>, window_params = [{transform_indices = @transform_0, window_bounds = array<i64: 12, 128>}, {pipeline_mode = #tpu.pipeline_mode<synchronous>, transform_indices = @transform_1, window_bounds = array<i64: 8, 12>}, {transform_indices = @transform_2, window_bounds = array<i64: 8, 128>}]} {
    %c0 = arith.constant 0 : index
    %c0_0 = arith.constant 0 : index
    %0 = vector.load %arg2[%c0, %c0_0] : memref<8x12xbf16, #tpu.memory_space<vmem>>, vector<8x12xbf16>
    %c0_1 = arith.constant 0 : index
    %c0_2 = arith.constant 0 : index
    %1 = vector.load %arg1[%c0_1, %c0_2] : memref<12x128xbf16, #tpu.memory_space<vmem>>, vector<12x128xbf16>
    %cst = arith.constant dense<0.000000e+00> : vector<8x128xf32>
    %2 = tpu.matmul %0, %1, %cst {dimension_numbers = #tpu.dot_dimension_numbers<[1], [0], [0], [1], [0, 0, 1, 1], [], []>} : vector<8x12xbf16>, vector<12x128xbf16>, vector<8x128xf32> -> vector<8x128xf32>
    %cst_3 = arith.constant 4.000000e+00 : f32
    %3 = vector.broadcast %cst_3 : f32 to vector<8x128xf32>
    %4 = arith.mulf %2, %3 : vector<8x128xf32>
    %5 = math.roundeven %4 : vector<8x128xf32>
    %cst_4 = arith.constant -8.000000e+00 : f32
    %cst_5 = arith.constant 7.000000e+00 : f32
    %6 = vector.broadcast %cst_4 : f32 to vector<8x128xf32>
    %7 = arith.maximumf %6, %5 : vector<8x128xf32>
    %8 = vector.broadcast %cst_5 : f32 to vector<8x128xf32>
    %9 = arith.minimumf %8, %7 : vector<8x128xf32>
    %cst_6 = arith.constant 2.500000e-01 : f32
    %10 = vector.broadcast %cst_6 : f32 to vector<8x128xf32>
    %11 = arith.mulf %9, %10 : vector<8x128xf32>
    %12 = arith.truncf %11 : vector<8x128xf32> to vector<8x128xbf16>
    %c0_7 = arith.constant 0 : index
    %c0_8 = arith.constant 0 : index
    %13 = vector.load %arg3[%c0_7, %c0_8] : memref<8x128xbf16, #tpu.memory_space<vmem>>, vector<8x128xbf16>
    tpu.vector_store %arg3[%c0_7, %c0_8], %12 {strides = array<i32>} : memref<8x128xbf16, #tpu.memory_space<vmem>>, vector<8x128xbf16>,
    return
  }
  func.func @transform_0(%arg0: i32) -> (i32, i32) {
    %c0_i32 = arith.constant 0 : i32
    %c0_i32_0 = arith.constant 0 : i32
    return %c0_i32, %arg0 : i32, i32
  }
  func.func @transform_1(%arg0: i32) -> (i32, i32) {
    %c0_i32 = arith.constant 0 : i32
    %c0_i32_0 = arith.constant 0 : i32
    %c0_i32_1 = arith.constant 0 : i32
    return %c0_i32, %c0_i32_0 : i32, i32
  }
  func.func @transform_2(%arg0: i32) -> (i32, i32) {
    %c0_i32 = arith.constant 0 : i32
    %c0_i32_0 = arith.constant 0 : i32
    return %c0_i32, %arg0 : i32, i32
  }
}

</mosaic_0001>

<bundles_post_ra>
// kernel: tpu_custom_call.1
= control target key start
LH: loop header
LB: loop body
LE: loop exit
PB: predicated region body
PF: predicated region fallthrough
CT: control target
= control target key end

     0   :  { %7 = vsyncpa [#allocation3], 0  ;;  %s267_s0 = inlined_call_operand.hbm [shape: bf16[12,128], index: 0, kind: input, shape index: {}]   ;;  %s268_s1 = inlined_call_operand.hbm [shape: bf16[8,12], index: 1, kind: input, shape index: {}]   ;;  %s269_s2 = inlined_call_operand.hbm [shape: bf16[8,128], index: 2, kind: output, shape index: {}]  }
   0x1   :  { %8 = vsyncpa [#allocation6], 0 }
   0x2   :  { %9 = vsyncpa [#allocation4], 0  ;;  %s209_s9 = smov [#allocation2]   ;;  %s137_s13 = scalar_lea.hbm %s267_s0, 128 }
   0x3   :  { %s15_s10 = sshll.u32 %s209_s9, 4  ;;  %p138_p0 = scmp.ne.s32.totalorder %s267_s0, %s137_s13  ;;  %s16_s10 = int_to_ptr.vmem [resolvable:$true] %s15_s10 }
   0x4   :  { %p141_p1 = scmp.lt.u32.totalorder %s137_s13, %s267_s0 }
   0x6   :  { %p143_p2 = pnand %p141_p1, %p138_p0 }
   0x8   :  { %146 = shalt.err (!%p143_p2)
}
   0x9   :  { %s147_s18 = scalar_lea.vmem %s16_s10, 128  ;;  %p152_p4 = scmp.lt.s32.totalorder %s16_s10, %s16_s10 }
   0xa   :  { %p148_p3 = scmp.ne.s32.totalorder %s16_s10, %s147_s18  ;;  %p153_p5 = scmp.lt.s32.totalorder %s147_s18, %s147_s18 }
   0xc   :  { %p154_p6 = por %p153_p5, %p152_p4 }
   0xe   :  { %p155_p7 = pnand %p154_p6, %p148_p3 }
  0x10   :  { %158 = shalt.err (!%p155_p7)
}
  0x11   :  { %s210_s19 = smov 64   ;;  %s211_s20 = smov 4  }
  0x12   :  { %21 = dma.hbm_to_vmem [thread:$0]  %s267_s0, 128, %s16_s10, [#allocation3], %s210_s19, %s210_s19, %s211_s20  }
  0x13   :  { %s212_s23 = smov [#allocation5]   ;;  %s159_s27 = scalar_lea.hbm %s268_s1, 64 }
  0x14   :  { %s28_s24 = sshll.u32 %s212_s23, 4  ;;  %p160_p8 = scmp.ne.s32.totalorder %s268_s1, %s159_s27  ;;  %s29_s24 = int_to_ptr.vmem [resolvable:$true] %s28_s24 }
  0x15   :  { %p163_p9 = scmp.lt.u32.totalorder %s159_s27, %s268_s1 }
  0x17   :  { %p165_p10 = pnand %p163_p9, %p160_p8 }
  0x19   :  { %168 = shalt.err (!%p165_p10)
}
  0x1a   :  { %s169_s4 = scalar_lea.vmem %s29_s24, 64  ;;  %p174_p12 = scmp.lt.s32.totalorder %s29_s24, %s29_s24 }
  0x1b   :  { %p170_p11 = scmp.ne.s32.totalorder %s29_s24, %s169_s4  ;;  %p175_p13 = scmp.lt.s32.totalorder %s169_s4, %s169_s4 }
  0x1d   :  { %p176_p0 = por %p175_p13, %p174_p12 }
  0x1f   :  { %p177_p1 = pnand %p176_p0, %p170_p11 }
  0x21   :  { %180 = shalt.err (!%p177_p1)
}
  0x22   :  { %31 = dma.hbm_to_vmem [thread:$0]  %s268_s1, 64, %s29_s24, [#allocation6]  }
  0x23   :  { %203 = dma.done.wait [#allocation3], 128  }
  0x24   :  { %204 = vsyncadd [#allocation3], 4294967168 }
  0x25   :  { %205 = dma.done.wait [#allocation6], 64  }
  0x26   :  { %206 = vsyncadd [#allocation6], 4294967232  ;;  %v213_v0 = vmov 0.0   ;;  %vm214_vm0 = vmmov 0   ;;  %vm51_vm1 = vcmask 1045504   ;;  %vm47_vm2 = vcmask 97280  }
  0x27   :  { %122 = vmatprep.subr.bf16.mxu0 %v213_v0  ;;  %124 = vmatprep.mubr.msk.bf16.mxu0 %vm214_vm0, %v213_v0  ;;  %v136_v1 = vld [vmem:[#allocation2] sm:$0x3f]   ;;  %v39_v3 = vld [vmem:[#allocation5] sm:$0xf]  ;;  %s215_s1 = smov [#allocation7]  }
  0x28   :  { %v53_v2 = vsel %vm51_vm1, %v136_v1, 0  ;;  %s108_s6 = sshll.u32 %s215_s1, 4  ;;  %s109_s6 = int_to_ptr.vmem [resolvable:$true] %s108_s6 }
  0x29   :  { %123 = vmatpush3.bf16.msra.mxu0 %v53_v2  ;;  %s181_s7 = scalar_lea.vmem %s109_s6, 64  ;;  %p186_p3 = scmp.lt.s32.totalorder %s109_s6, %s109_s6 }
  0x2a   :  { %p182_p2 = scmp.ne.s32.totalorder %s109_s6, %s181_s7  ;;  %p187_p4 = scmp.lt.s32.totalorder %s181_s7, %s181_s7 }
  0x2c   :  { %125 = vmatmul.mubr.msk.bf16.vlgmr.msra.gmra.mrb[0].mxu0 %vm47_vm2, %v39_v3  ;;  %p188_p5 = por %p187_p4, %p186_p3 }
  0x2e   :  { %p189_p6 = pnand %p188_p5, %p182_p2 }
  0xff   :  { %v89_v4 = vpop.f32.mrb[0].mxu0 }
 0x100   :  { %v95_v5 = vmul.f32 4.0, %v89_v4  ;;  %v126_v6 = vpop.f32.mrb[1].mxu0 }
 0x101   :  { %v92_v7 = vpop.f32.mrb[2].mxu0 }
 0x102   :  { %v128_v8 = vround.rtne.f32 %v95_v5  ;;  %v127_v9 = vpop.f32.mrb[3].mxu0 }
 0x104   :  { %v97_v10 = vmax.f32 %v128_v8, -8.0 }
 0x106   :  { %v98_v11 = vmin.f32 %v97_v10, 7.0 }
 0x108   :  { %v99_v12 = vmul.f32 0.25, %v98_v11 }
 0x10a   :  { %v100_v13 = vpack.c.bf16 %v99_v12, %v99_v12 }
 0x10c   :  { %101 = vst [vmem:[#allocation7] sm:$0xf] %v100_v13 }
 0x10d   :  { %192 = shalt.err (!%p189_p6)
}
 0x10e   :  { %s193_s10 = scalar_lea.hbm %s269_s2, 64 }
 0x10f   :  { %p194_p7 = scmp.ne.s32.totalorder %s269_s2, %s193_s10  ;;  %p197_p8 = scmp.lt.u32.totalorder %s193_s10, %s269_s2 }
 0x111   :  { %p199_p9 = pnand %p197_p8, %p194_p7 }
 0x113   :  { %202 = shalt.err (!%p199_p9)
}
 0x114   :  { %111 = dma.vmem_to_hbm [thread:$0]  %s109_s6, 64, %s269_s2, [#allocation4]  }
 0x115   :  { %207 = dma.done.wait [#allocation4], 64  }
 0x116   :  { %208 = vsyncadd [#allocation4], 4294967232 }
 0x117   :  { %115 = vsyncpa [#allocation3], 1 }
 0x118   :  { %116 = vsyncpa [#allocation6], 1 }
 0x119   :  { %117 = vsyncpa [#allocation4], 1 }

</bundles_post_ra>
